<compile_context>
chip_gen: v7x
topology: tpu7x:2x2x1
jax: 0.10.0
libtpu: 0.0.40
codegen_flags: <defaults>
</compile_context>

<pallas_src>
import functools

import jax
import jax.numpy as jnp
from jax.experimental import pallas as pl
from jax.experimental.pallas import tpu as pltpu


def _kl_reward_kernel(q_ref, p_ref, o_ref, acc_ref, *, n_rows, n_cols,
                      block_rows, block_cols, needs_mask):
    i = pl.program_id(0)            # row-tile index ("parallel")
    j = pl.program_id(1)            # col-tile index ("arbitrary" reduction)

    # Zero the per-row-tile VMEM accumulator at the start of each reduction.
    @pl.when(j == 0)
    def _init():
        acc_ref[...] = jnp.zeros_like(acc_ref)

    eps = jnp.float32(1e-8)
    p = p_ref[...].astype(jnp.float32) + eps
    q = q_ref[...].astype(jnp.float32) + eps
    # Single log of the ratio: 1 log + 1 divide instead of 2 logs on the EUP.
    contrib = p * jnp.log(p / q)

    if needs_mask:
        row = i * block_rows + jax.lax.broadcasted_iota(
            jnp.int32, (block_rows, block_cols), 0)
        col = j * block_cols + jax.lax.broadcasted_iota(
            jnp.int32, (block_rows, block_cols), 1)
        valid = (row < n_rows) & (col < n_cols)
        contrib = jnp.where(valid, contrib, jnp.float32(0.0))

    # Vector accumulation only (VPU); keeps XLU / scalar unit off the
    # per-step critical path.
    acc_ref[...] += contrib

    # Single cross-lane reduce per row-tile, written to this tile's own
    # (1, 1) SMEM partial (no shared accumulator -> safe under megacore).
    @pl.when(j == pl.num_programs(1) - 1)
    def _finalize():
        o_ref[0, 0] = jnp.sum(acc_ref[...])


def reward_calculator_tsne(low_dim_similarity, high_dim_similarity, *,
                           tile_rows=256, tile_cols=2048):
    """Returns {'encoder_reward': scalar float32} matching the PyTorch module."""
    assert tile_rows % 8 == 0 and tile_cols % 128 == 0
    q = jnp.asarray(low_dim_similarity, jnp.float32)
    p = jnp.asarray(high_dim_similarity, jnp.float32)
    assert q.shape == p.shape and q.ndim == 2
    n_rows, n_cols = q.shape

    # Single full-extent block when small; aligned tiles otherwise.
    block_rows = n_rows if n_rows <= tile_rows else tile_rows
    block_cols = n_cols if n_cols <= tile_cols else tile_cols
    grid = (pl.cdiv(n_rows, block_rows), pl.cdiv(n_cols, block_cols))
    needs_mask = (n_rows % block_rows != 0) or (n_cols % block_cols != 0)

    # 2 inputs x 2 pipeline buffers + accumulator + headroom; cap at v7x's
    # 64 MiB physical VMEM, keep at least the usual 32 MiB scoped limit.
    block_bytes = block_rows * block_cols * 4
    vmem_limit = min(max(6 * block_bytes, 32 * 1024 * 1024), 64 * 1024 * 1024)

    kernel = functools.partial(
        _kl_reward_kernel,
        n_rows=n_rows, n_cols=n_cols,
        block_rows=block_rows, block_cols=block_cols,
        needs_mask=needs_mask)

    partials = pl.pallas_call(
        kernel,
        out_shape=jax.ShapeDtypeStruct((grid[0], 1), jnp.float32),
        grid_spec=pltpu.PrefetchScalarGridSpec(
            num_scalar_prefetch=0,
            grid=grid,
            in_specs=[
                pl.BlockSpec((block_rows, block_cols), lambda i, j: (i, j)),
                pl.BlockSpec((block_rows, block_cols), lambda i, j: (i, j)),
            ],
            # One (1,1) SMEM partial per row-tile, resident across the j axis.
            out_specs=pl.BlockSpec((1, 1), lambda i, j: (i, 0),
                                   memory_space=pltpu.SMEM),
            scratch_shapes=[pltpu.VMEM((block_rows, block_cols), jnp.float32)],
        ),
        compiler_params=pltpu.CompilerParams(
            dimension_semantics=("parallel", "arbitrary"),
            vmem_limit_bytes=vmem_limit,
        ),
    )(q, p)

    # encoder_reward = -KL  (sum of per-row-tile partial KL sums).
    return {"encoder_reward": -jnp.sum(partials)}


def _reference(low_dim_similarity, high_dim_similarity):
    p = high_dim_similarity.astype(jnp.float32) + 1e-8
    q = low_dim_similarity.astype(jnp.float32) + 1e-8
    return -jnp.sum(p * (jnp.log(p) - jnp.log(q)))


def _make_inputs(key, n):
    k1, k2 = jax.random.split(key)
    p_logits = jax.random.normal(k1, (n, n), dtype=jnp.float32)
    q_logits = jax.random.normal(k2, (n, n), dtype=jnp.float32)
    high = jax.nn.softmax(p_logits.reshape(-1)).reshape(n, n)
    low = jax.nn.softmax(q_logits.reshape(-1)).reshape(n, n)
    return low, high


if __name__ == "__main__":
    key = jax.random.PRNGKey(0)

    # Primary check: N = 128 (single full-extent block, grid = (1, 1)).
    low, high = _make_inputs(key, 128)
    result = reward_calculator_tsne(low, high)
    reward = jax.block_until_ready(result["encoder_reward"])
    ref = _reference(low, high)
    assert jnp.allclose(reward, ref, rtol=1e-5, atol=1e-5), (reward, ref)

    # Secondary check: non-divisible N exercises multi-row-tile + masking
    # (uses small tiles so the tiled/masked path runs even at a tiny shape).
    low2, high2 = _make_inputs(jax.random.PRNGKey(1), 200)
    result2 = reward_calculator_tsne(low2, high2, tile_rows=64, tile_cols=128)
    reward2 = jax.block_until_ready(result2["encoder_reward"])
    ref2 = _reference(low2, high2)
    assert jnp.allclose(reward2, ref2, rtol=1e-5, atol=1e-5), (reward2, ref2)

    # TODO(synk): further wins require fusing this reduction into the kernel
    # that produces the similarity matrices (log-softmax formulation) to avoid
    # the 2*N^2*4-byte HBM round trip.
    print("KERNEL_OK")
</pallas_src>

<mosaic_0001>
module attributes {stable_mosaic.version = 11 : i64} {
  func.func @_kl_reward_kernel(%arg0: i32, %arg1: i32, %arg2: memref<128x128xf32, #tpu.memory_space<vmem>>, %arg3: memref<128x128xf32, #tpu.memory_space<vmem>>, %arg4: memref<1x1xf32, #tpu.memory_space<smem>>, %arg5: memref<128x128xf32, #tpu.memory_space<vmem>>) attributes {dimension_semantics = [#tpu.dimension_semantics<parallel>, #tpu.dimension_semantics<arbitrary>], iteration_bounds = array<i64: 1, 1>, scalar_prefetch = 0 : i64, scratch_operands = 1 : i64, tpu.core_type = #tpu.core_type<tc>, window_params = [{transform_indices = @transform_0, window_bounds = array<i64: 128, 128>}, {transform_indices = @transform_1, window_bounds = array<i64: 128, 128>}, {transform_indices = @transform_2, window_bounds = array<i64: 1, 1>}]} {
    %c0_i32 = arith.constant 0 : i32
    %0 = arith.cmpi eq, %arg1, %c0_i32 : i32
    %1 = arith.extui %0 : i1 to i32
    %c0_i32_0 = arith.constant 0 : i32
    %2 = arith.cmpi ne, %1, %c0_i32_0 : i32
    scf.if %2 {
      %cst_11 = arith.constant 0.000000e+00 : f32
      %18 = vector.broadcast %cst_11 : f32 to vector<128x128xf32>
      %c0_12 = arith.constant 0 : index
      %c0_13 = arith.constant 0 : index
      %19 = vector.load %arg5[%c0_12, %c0_13] : memref<128x128xf32, #tpu.memory_space<vmem>>, vector<128x128xf32>
      tpu.vector_store %arg5[%c0_12, %c0_13], %18 {strides = array<i32>} : memref<128x128xf32, #tpu.memory_space<vmem>>, vector<128x128xf32>,
    } else {
    }
    %c0 = arith.constant 0 : index
    %c0_1 = arith.constant 0 : index
    %3 = vector.load %arg3[%c0, %c0_1] : memref<128x128xf32, #tpu.memory_space<vmem>>, vector<128x128xf32>
    %cst = arith.constant 9.99999993E-9 : f32
    %4 = vector.broadcast %cst : f32 to vector<128x128xf32>
    %5 = arith.addf %3, %4 : vector<128x128xf32>
    %c0_2 = arith.constant 0 : index
    %c0_3 = arith.constant 0 : index
    %6 = vector.load %arg2[%c0_2, %c0_3] : memref<128x128xf32, #tpu.memory_space<vmem>>, vector<128x128xf32>
    %cst_4 = arith.constant 9.99999993E-9 : f32
    %7 = vector.broadcast %cst_4 : f32 to vector<128x128xf32>
    %8 = arith.addf %6, %7 : vector<128x128xf32>
    %9 = arith.divf %5, %8 : vector<128x128xf32>
    %10 = math.log %9 : vector<128x128xf32>
    %11 = arith.mulf %5, %10 : vector<128x128xf32>
    %c0_5 = arith.constant 0 : index
    %c0_6 = arith.constant 0 : index
    %12 = vector.load %arg5[%c0_5, %c0_6] : memref<128x128xf32, #tpu.memory_space<vmem>>, vector<128x128xf32>
    %13 = arith.addf %12, %11 : vector<128x128xf32>
    %c0_7 = arith.constant 0 : index
    %c0_8 = arith.constant 0 : index
    %14 = vector.load %arg5[%c0_7, %c0_8] : memref<128x128xf32, #tpu.memory_space<vmem>>, vector<128x128xf32>
    tpu.vector_store %arg5[%c0_7, %c0_8], %13 {strides = array<i32>} : memref<128x128xf32, #tpu.memory_space<vmem>>, vector<128x128xf32>,
    %c0_i32_9 = arith.constant 0 : i32
    %15 = arith.cmpi eq, %arg1, %c0_i32_9 : i32
    %16 = arith.extui %15 : i1 to i32
    %c0_i32_10 = arith.constant 0 : i32
    %17 = arith.cmpi ne, %16, %c0_i32_10 : i32
    scf.if %17 {
      %c0_11 = arith.constant 0 : index
      %c0_12 = arith.constant 0 : index
      %18 = vector.load %arg5[%c0_11, %c0_12] : memref<128x128xf32, #tpu.memory_space<vmem>>, vector<128x128xf32>
      %19 = vector.shape_cast %18 : vector<128x128xf32> to vector<1x128x128xf32>
      %cst_13 = arith.constant dense<0.000000e+00> : vector<1xf32>
      %20 = vector.multi_reduction <add>, %19, %cst_13 [1, 2] : vector<1x128x128xf32> to vector<1xf32>
      %21 = vector.shape_cast %20 : vector<1xf32> to vector<1x1x1xf32>
      %22 = vector.extract %21[0, 0, 0] : f32 from vector<1x1x1xf32>
      %c0_14 = arith.constant 0 : index
      %c0_15 = arith.constant 0 : index
      %23 = memref.load %arg4[%c0_14, %c0_15] : memref<1x1xf32, #tpu.memory_space<smem>>
      memref.store %22, %arg4[%c0_14, %c0_15] : memref<1x1xf32, #tpu.memory_space<smem>>
    } else {
    }
    return
  }
  func.func @transform_0(%arg0: i32, %arg1: i32) -> (i32, i32) {
    %c0_i32 = arith.constant 0 : i32
    return %arg0, %arg1 : i32, i32
  }
  func.func @transform_1(%arg0: i32, %arg1: i32) -> (i32, i32) {
    %c0_i32 = arith.constant 0 : i32
    return %arg0, %arg1 : i32, i32
  }
  func.func @transform_2(%arg0: i32, %arg1: i32) -> (i32, i32) {
    %c0_i32 = arith.constant 0 : i32
    %c0_i32_0 = arith.constant 0 : i32
    return %arg0, %c0_i32 : i32, i32
  }
}

</mosaic_0001>

<bundles_post_ra>
// kernel: tpu_custom_call.1
= control target key start
LH: loop header
LB: loop body
LE: loop exit
PB: predicated region body
PF: predicated region fallthrough
CT: control target
= control target key end

     0   :  { %7 = vsyncpa [#allocation4], 0  ;;  %s559_s0 = inlined_call_operand.hbm [shape: f32[128,128], index: 0, kind: input, shape index: {}]   ;;  %s560_s1 = inlined_call_operand.hbm [shape: f32[128,128], index: 1, kind: input, shape index: {}]   ;;  %s561_s2 = inlined_call_operand.hbm [shape: f32[1,1], index: 2, kind: output, shape index: {}]  }
   0x1   :  { %8 = vsyncpa [#allocation7], 0 }
   0x2   :  { %9 = vsyncpa [#allocation5], 0  ;;  %s443_s9 = smov [#allocation3]   ;;  %s383_s13 = scalar_lea.hbm %s559_s0, 2048 }
   0x3   :  { %s15_s10 = sshll.u32 %s443_s9, 4  ;;  %p384_p0 = scmp.ne.s32.totalorder %s559_s0, %s383_s13  ;;  %s16_s10 = int_to_ptr.vmem [resolvable:$true] %s15_s10 }
   0x4   :  { %p387_p1 = scmp.lt.u32.totalorder %s383_s13, %s559_s0 }
   0x6   :  { %p389_p2 = pnand %p387_p1, %p384_p0 }
   0x8   :  { %392 = shalt.err (!%p389_p2)
}
   0x9   :  { %s393_s18 = scalar_lea.vmem %s16_s10, 2048  ;;  %p398_p4 = scmp.lt.s32.totalorder %s16_s10, %s16_s10 }
   0xa   :  { %p394_p3 = scmp.ne.s32.totalorder %s16_s10, %s393_s18  ;;  %p399_p5 = scmp.lt.s32.totalorder %s393_s18, %s393_s18 }
   0xc   :  { %p400_p6 = por %p399_p5, %p398_p4 }
   0xe   :  { %p401_p7 = pnand %p400_p6, %p394_p3 }
  0x10   :  { %404 = shalt.err (!%p401_p7)
}
  0x11   :  { %s444_s19 = smov 128   ;;  %s445_s20 = smov 8  }
  0x12   :  { %21 = dma.hbm_to_vmem [thread:$0]  %s559_s0, 2048, %s16_s10, [#allocation4], %s444_s19, %s444_s19, %s445_s20  }
  0x13   :  { %s446_s23 = smov [#allocation6]   ;;  %s405_s27 = scalar_lea.hbm %s560_s1, 2048 }
  0x14   :  { %s27_s24 = sshll.u32 %s446_s23, 4  ;;  %p406_p8 = scmp.ne.s32.totalorder %s560_s1, %s405_s27  ;;  %s28_s24 = int_to_ptr.vmem [resolvable:$true] %s27_s24 }
  0x15   :  { %p409_p9 = scmp.lt.u32.totalorder %s405_s27, %s560_s1 }
  0x17   :  { %p411_p10 = pnand %p409_p9, %p406_p8 }
  0x19   :  { %414 = shalt.err (!%p411_p10)
}
  0x1a   :  { %s415_s4 = scalar_lea.vmem %s28_s24, 2048  ;;  %p420_p12 = scmp.lt.s32.totalorder %s28_s24, %s28_s24 }
  0x1b   :  { %p416_p11 = scmp.ne.s32.totalorder %s28_s24, %s415_s4  ;;  %p421_p13 = scmp.lt.s32.totalorder %s415_s4, %s415_s4 }
  0x1d   :  { %p422_p0 = por %p421_p13, %p420_p12 }
  0x1f   :  { %p423_p1 = pnand %p422_p0, %p416_p11 }
  0x21   :  { %426 = shalt.err (!%p423_p1)
}
  0x22   :  { %33 = dma.hbm_to_vmem [thread:$0]  %s560_s1, 2048, %s28_s24, [#allocation7], %s444_s19, %s444_s19, %s445_s20  }
  0x23   :  { %437 = dma.done.wait [#allocation4], 2048  }
  0x24   :  { %438 = vsyncadd [#allocation4], 4294965248 }
  0x25   :  { %439 = dma.done.wait [#allocation7], 2048  }
  0x26   :  { %440 = vsyncadd [#allocation7], 4294965248  ;;  %v92_v0 = vld [vmem:[#allocation3] sm:$0xff]  ;;  %v93_v1 = vld [vmem:[#allocation3 + $0x8] sm:$0xff]  ;;  %s427_s8 = scalar_lea.hbm %s561_s2, 16 }
  0x27   :  { %v94_v2 = vld [vmem:[#allocation3 + $0x10] sm:$0xff]  ;;  %v95_v3 = vld [vmem:[#allocation3 + $0x18] sm:$0xff]  ;;  %v108_v4 = vadd.f32 1e-08, %v92_v0  ;;  %v96_v5 = vld [vmem:[#allocation3 + $0x20] sm:$0xff]  ;;  %p428_p2 = scmp.ne.s32.totalorder %s561_s2, %s427_s8  ;;  %p431_p3 = scmp.lt.u32.totalorder %s427_s8, %s561_s2 }
  0x28   :  { %v97_v6 = vld [vmem:[#allocation3 + $0x28] sm:$0xff]  ;;  %v98_v7 = vld [vmem:[#allocation3 + $0x30] sm:$0xff]  ;;  %v109_v8 = vadd.f32 1e-08, %v93_v1  ;;  %v99_v9 = vld [vmem:[#allocation3 + $0x38] sm:$0xff] }
  0x29   :  { %v110_v10 = vadd.f32 1e-08, %v94_v2  ;;  %319 = vrcp.f32 %v108_v4  ;;  %v100_v11 = vld [vmem:[#allocation3 + $0x40] sm:$0xff]  ;;  %v101_v12 = vld [vmem:[#allocation3 + $0x48] sm:$0xff]  ;;  %v111_v13 = vadd.f32 1e-08, %v95_v3  ;;  %p433_p4 = pnand %p431_p3, %p428_p2 }
  0x2a   :  { %321 = vrcp.f32 %v109_v8  ;;  %v112_v14 = vadd.f32 1e-08, %v96_v5  ;;  %v113_v15 = vadd.f32 1e-08, %v97_v6  ;;  %v114_v16 = vadd.f32 1e-08, %v98_v7 }
  0x2b   :  { %323 = vrcp.f32 %v110_v10  ;;  %v102_v17 = vld [vmem:[#allocation3 + $0x50] sm:$0xff]  ;;  %v115_v18 = vadd.f32 1e-08, %v99_v9  ;;  %v103_v19 = vld [vmem:[#allocation3 + $0x58] sm:$0xff]  ;;  %v116_v20 = vadd.f32 1e-08, %v100_v11 }
  0x2c   :  { %325 = vrcp.f32 %v111_v13  ;;  %v60_v21 = vld [vmem:[#allocation6] sm:$0xff]  ;;  %v117_v23 = vadd.f32 1e-08, %v101_v12  ;;  %v61_v24 = vld [vmem:[#allocation6 + $0x8] sm:$0xff]  ;;  %v118_v26 = vadd.f32 1e-08, %v102_v17 }
  0x2d   :  { %327 = vrcp.f32 %v112_v14  ;;  %v104_v22 = vld [vmem:[#allocation3 + $0x60] sm:$0xff]  ;;  %v105_v25 = vld [vmem:[#allocation3 + $0x68] sm:$0xff]  ;;  %v62_v27 = vld [vmem:[#allocation6 + $0x10] sm:$0xff]  ;;  %v119_v29 = vadd.f32 1e-08, %v103_v19 }
  0x2e   :  { %329 = vrcp.f32 %v113_v15  ;;  %v106_v28 = vld [vmem:[#allocation3 + $0x70] sm:$0xff]  ;;  %v63_v30 = vld [vmem:[#allocation6 + $0x18] sm:$0xff]  ;;  %v487_v31 = vadd.f32 1e-08, %v60_v21  ;;  %v120_v33 = vadd.f32 1e-08, %v104_v22 }
  0x2f   :  { %331 = vrcp.f32 %v114_v16  ;;  %v107_v32 = vld [vmem:[#allocation3 + $0x78] sm:$0xff]  ;;  %v64_v34 = vld [vmem:[#allocation6 + $0x20] sm:$0xff]  ;;  %v489_v35 = vadd.f32 1e-08, %v61_v24  ;;  %v121_v36 = vadd.f32 1e-08, %v105_v25 }
  0x30   :  { %333 = vrcp.f32 %v115_v18  ;;  %v65_v38 = vld [vmem:[#allocation6 + $0x28] sm:$0xff]  ;;  %v491_v39 = vadd.f32 1e-08, %v62_v27  ;;  %v122_v40 = vadd.f32 1e-08, %v106_v28  ;;  %v66_v42 = vld [vmem:[#allocation6 + $0x30] sm:$0xff] }
  0x31   :  { %335 = vrcp.f32 %v116_v20  ;;  %v493_v43 = vadd.f32 1e-08, %v63_v30  ;;  %v123_v44 = vadd.f32 1e-08, %v107_v32  ;;  %v67_v46 = vld [vmem:[#allocation6 + $0x38] sm:$0xff]  ;;  %v68_v53 = vld [vmem:[#allocation6 + $0x40] sm:$0xff] }
  0x32   :  { %337 = vrcp.f32 %v117_v23  ;;  %v495_v47 = vadd.f32 1e-08, %v64_v34  ;;  %v498_v50 = vadd.f32 1e-08, %v65_v38  ;;  %v501_v54 = vadd.f32 1e-08, %v66_v42 }
  0x33   :  { %v320_v37 = vpop.eup %319  ;;  %339 = vrcp.f32 %v118_v26  ;;  %v504_v57 = vadd.f32 1e-08, %v67_v46  ;;  %v69_v60 = vld [vmem:[#allocation6 + $0x48] sm:$0xff]  ;;  %v508_v63 = vadd.f32 1e-08, %v68_v53  ;;  %v70_v2 = vld [vmem:[#allocation6 + $0x50] sm:$0xff] }
  0x34   :  { %v322_v41 = vpop.eup %321  ;;  %341 = vrcp.f32 %v119_v29  ;;  %v125_v48 = vmul.f32 %v320_v37, %v487_v31  ;;  %v512_v5 = vadd.f32 1e-08, %v69_v60  ;;  %v71_v8 = vld [vmem:[#allocation6 + $0x58] sm:$0xff]  ;;  %v515_v10 = vadd.f32 1e-08, %v70_v2  ;;  %v72_v13 = vld [vmem:[#allocation6 + $0x60] sm:$0xff] }
  0x35   :  { %v324_v45 = vpop.eup %323  ;;  %343 = vrcp.f32 %v120_v33  ;;  %v127_v51 = vmul.f32 %v322_v41, %v489_v35  ;;  %v518_v15 = vadd.f32 1e-08, %v71_v8  ;;  %v73_v18 = vld [vmem:[#allocation6 + $0x68] sm:$0xff]  ;;  %v74_v20 = vld [vmem:[#allocation6 + $0x70] sm:$0xff]  ;;  %v521_v21 = vadd.f32 1e-08, %v72_v13 }
  0x36   :  { %v326_v49 = vpop.eup %325  ;;  %345 = vrcp.f32 %v121_v36  ;;  %v129_v55 = vmul.f32 %v324_v45, %v491_v39  ;;  %v75_v25 = vld [vmem:[#allocation6 + $0x78] sm:$0xff]  ;;  %v524_v26 = vadd.f32 1e-08, %v73_v18  ;;  %v527_v30 = vadd.f32 1e-08, %v74_v20 }
  0x37   :  { %v328_v52 = vpop.eup %327  ;;  %347 = vrcp.f32 %v122_v40  ;;  %v131_v58 = vmul.f32 %v326_v49, %v493_v43  ;;  %v91_v40 = vadd.f32 1e-08, %v75_v25 }
  0x38   :  { %v330_v56 = vpop.eup %329  ;;  %349 = vrcp.f32 %v123_v44  ;;  %v133_v61 = vmul.f32 %v328_v52, %v495_v47 }
  0x39   :  { %v332_v59 = vpop.eup %331  ;;  %351 = vlog2.f32 %v125_v48  ;;  %v135_v0 = vmul.f32 %v330_v56, %v498_v50 }
  0x3a   :  { %v334_v62 = vpop.eup %333  ;;  %353 = vlog2.f32 %v127_v51  ;;  %v137_v3 = vmul.f32 %v332_v59, %v501_v54 }
  0x3b   :  { %v336_v1 = vpop.eup %335  ;;  %355 = vlog2.f32 %v129_v55  ;;  %v139_v6 = vmul.f32 %v334_v62, %v504_v57 }
  0x3c   :  { %v338_v4 = vpop.eup %337  ;;  %357 = vlog2.f32 %v131_v58  ;;  %v141_v11 = vmul.f32 %v336_v1, %v508_v63 }
  0x3d   :  { %v340_v7 = vpop.eup %339  ;;  %359 = vlog2.f32 %v133_v61  ;;  %v143_v16 = vmul.f32 %v338_v4, %v512_v5 }
  0x3e   :  { %v342_v9 = vpop.eup %341  ;;  %361 = vlog2.f32 %v135_v0  ;;  %v145_v22 = vmul.f32 %v340_v7, %v515_v10 }
  0x3f   :  { %v344_v12 = vpop.eup %343  ;;  %363 = vlog2.f32 %v137_v3  ;;  %v147_v27 = vmul.f32 %v342_v9, %v518_v15 }
  0x40   :  { %v346_v14 = vpop.eup %345  ;;  %365 = vlog2.f32 %v139_v6  ;;  %v149_v34 = vmul.f32 %v344_v12, %v521_v21 }
  0x41   :  { %v348_v17 = vpop.eup %347  ;;  %367 = vlog2.f32 %v141_v11  ;;  %v151_v45 = vmul.f32 %v346_v14, %v524_v26 }
  0x42   :  { %v350_v19 = vpop.eup %349  ;;  %369 = vlog2.f32 %v143_v16 }
  0x43   :  { %v352_v23 = vpop.eup %351  ;;  %371 = vlog2.f32 %v145_v22  ;;  %v155_v60 = vmul.f32 %v350_v19, %v91_v40 }
  0x44   :  { %v354_v24 = vpop.eup %353  ;;  %v157_v28 = vmul.f32 0.6931472, %v352_v23  ;;  %373 = vlog2.f32 %v147_v27 }
  0x45   :  { %v356_v29 = vpop.eup %355  ;;  %v159_v32 = vmul.f32 0.6931472, %v354_v24  ;;  %375 = vlog2.f32 %v149_v34 }
  0x46   :  { %v358_v33 = vpop.eup %357  ;;  %v161_v36 = vmul.f32 0.6931472, %v356_v29  ;;  %v188_v37 = vmul.f32 %v157_v28, %v487_v31  ;;  %v153_v31 = vmul.f32 %v348_v17, %v527_v30  ;;  %377 = vlog2.f32 %v151_v45 }
  0x47   :  { %v360_v38 = vpop.eup %359  ;;  %v163_v41 = vmul.f32 0.6931472, %v358_v33  ;;  %v189_v42 = vmul.f32 %v159_v32, %v489_v35 }
  0x48   :  { %v362_v44 = vpop.eup %361  ;;  %v165_v46 = vmul.f32 0.6931472, %v360_v38  ;;  %v190_v48 = vmul.f32 %v161_v36, %v491_v39  ;;  %379 = vlog2.f32 %v153_v31 }
  0x49   :  { %v364_v49 = vpop.eup %363  ;;  %v167_v51 = vmul.f32 0.6931472, %v362_v44  ;;  %v191_v52 = vmul.f32 %v163_v41, %v493_v43  ;;  %v271_v53 = vadd.f32 %v189_v42, %v188_v37  ;;  %381 = vlog2.f32 %v155_v60 }
  0x4a   :  { %v366_v55 = vpop.eup %365  ;;  %v169_v56 = vmul.f32 0.6931472, %v364_v49  ;;  %v192_v58 = vmul.f32 %v165_v46, %v495_v47 }
  0x4b   :  { %v272_v35 = vadd.f32 %v271_v53, %v190_v48  ;;  %v368_v59 = vpop.eup %367  ;;  %v171_v61 = vmul.f32 0.6931472, %v366_v55  ;;  %v193_v62 = vmul.f32 %v167_v51, %v498_v50 }
  0x4c   :  { %v370_v0 = vpop.eup %369  ;;  %v173_v1 = vmul.f32 0.6931472, %v368_v59  ;;  %v194_v43 = vmul.f32 %v169_v56, %v501_v54 }
  0x4d   :  { %v273_v39 = vadd.f32 %v272_v35, %v191_v52  ;;  %v372_v3 = vpop.eup %371  ;;  %v175_v4 = vmul.f32 0.6931472, %v370_v0  ;;  %v195_v6 = vmul.f32 %v171_v61, %v504_v57 }
  0x4e   :  { %v374_v7 = vpop.eup %373  ;;  %v177_v8 = vmul.f32 0.6931472, %v372_v3  ;;  %v196_v9 = vmul.f32 %v173_v1, %v508_v63 }
  0x4f   :  { %v274_v2 = vadd.f32 %v273_v39, %v192_v58  ;;  %v376_v12 = vpop.eup %375  ;;  %v179_v50 = vmul.f32 0.6931472, %v374_v7  ;;  %v197_v13 = vmul.f32 %v175_v4, %v512_v5 }
  0x50   :  { %v378_v16 = vpop.eup %377  ;;  %v181_v17 = vmul.f32 0.6931472, %v376_v12  ;;  %v198_v54 = vmul.f32 %v177_v8, %v515_v10 }
  0x51   :  { %v275_v47 = vadd.f32 %v274_v2, %v193_v62  ;;  %v183_v20 = vmul.f32 0.6931472, %v378_v16  ;;  %v199_v57 = vmul.f32 %v179_v50, %v518_v15 }
  0x52   :  { %v380_v19 = vpop.eup %379  ;;  %v200_v63 = vmul.f32 %v181_v17, %v521_v21 }
  0x53   :  { %v276_v11 = vadd.f32 %v275_v47, %v194_v43  ;;  %v382_v23 = vpop.eup %381  ;;  %v185_v24 = vmul.f32 0.6931472, %v380_v19  ;;  %v201_v28 = vmul.f32 %v183_v20, %v524_v26 }
  0x54   :  { %v187_v27 = vmul.f32 0.6931472, %v382_v23 }
  0x55   :  { %v277_v14 = vadd.f32 %v276_v11, %v195_v6  ;;  %v202_v29 = vmul.f32 %v185_v24, %v527_v30 }
  0x56   :  { %v203_v33 = vmul.f32 %v187_v27, %v91_v40 }
  0x57   :  { %v278_v18 = vadd.f32 %v277_v14, %v196_v9 }
  0x59   :  { %v279_v22 = vadd.f32 %v278_v18, %v197_v13 }
  0x5b   :  { %v280_v25 = vadd.f32 %v279_v22, %v198_v54 }
  0x5d   :  { %v281_v5 = vadd.f32 %v280_v25, %v199_v57 }
  0x5f   :  { %v282_v32 = vadd.f32 %v281_v5, %v200_v63 }
  0x61   :  { %v283_v10 = vadd.f32 %v282_v32, %v201_v28 }
  0x63   :  { %v284_v34 = vadd.f32 %v283_v10, %v202_v29 }
  0x65   :  { %v285_v36 = vadd.f32 %v284_v34, %v203_v33 }
  0x67   :  { %286 = vadd.xlane.f32.xlu0 %v285_v36 }
  0xf4   :  { %v287_v37 = vpop.xlane.xlu0 %286 }
  0xf5   :  { %v288_v15 = vrot.slane %v287_v37, 4 }
  0xf7   :  { %v289_v38 = vadd.f32 %v288_v15, %v287_v37 }
  0xf9   :  { %v290_v41 = vrot.slane %v289_v38, 2 }
  0xfb   :  { %v291_v42 = vadd.f32 %v290_v41, %v289_v38 }
  0xfd   :  { %v292_v44 = vrot.slane %v291_v42, 1 }
  0xff   :  { %v293_v21 = vadd.f32 %v292_v44, %v291_v42 }
 0x101   :  { %312 = vpush %v293_v21 }
 0x132   :  { %s313_s1 = spop %312 }
 0x133   :  { %296 = sst [smem:[#allocation8]] %s313_s1 }
 0x134   :  { %436 = shalt.err (!%p433_p4)
}
 0x135   :  { %s447_s13 = smov [#allocation8]  }
 0x136   :  { %304 = dma.smem_to_hbm %s447_s13, 16, %s561_s2, [#allocation5]  }
 0x137   :  { %441 = dma.done.wait [#allocation5], 16  }
 0x138   :  { %442 = vsyncadd [#allocation5], 4294967280 }
 0x139   :  { %308 = sfence }
 0x13a   :  { %309 = vsyncpa [#allocation4], 1 }
 0x13b   :  { %310 = vsyncpa [#allocation7], 1 }
 0x13c   :  { %311 = vsyncpa [#allocation5], 1 }

</bundles_post_ra>
